<compile_context>
chip_gen: v7x
topology: tpu7x:2x2x1
jax: 0.10.0
libtpu: 0.0.40
codegen_flags: <defaults>
</compile_context>

<pallas_src>
import functools

import jax
import jax.numpy as jnp
from jax import lax
from jax.experimental import pallas as pl
from jax.experimental.pallas import tpu as pltpu

EPS = 1e-5                       # torch.nn.GroupNorm default eps
_RESIDENT_LIMIT = 2 << 20        # max f32 bytes for one image's (G, L) slab
_BLOCK_TARGET = 2 << 20          # target per-grid-step input block size
_CHUNK_LANES = 8192              # L-chunk width for the large-spatial path


def _round_up(x, m):
    return ((x + m - 1) // m) * m


# -----------------------------------------------------------------------------
# Fast path: every image in the block is fully VMEM-resident.
# -----------------------------------------------------------------------------
def _resident_kernel(x_ref, g_ref, b_ref, a_ref, o_ref, *, hw, cg, l_valid):
    # x_ref / o_ref : (Nb, G, Lp)  Nb images, all groups, lane-padded length Lp
    # g/b/a_ref     : (G, Cg)      compact per-channel params
    x = x_ref[...].astype(jnp.float32)
    _, gdim, lp = x.shape

    col = lax.broadcasted_iota(jnp.int32, (gdim, lp), 1)

    # Two-pass GroupNorm statistics (torch/JAX var numerics).  Padded lanes are
    # zero so the plain sum for the mean is exact; centered squares are masked.
    mean = jnp.sum(x, axis=-1, keepdims=True) * (1.0 / l_valid)   # (Nb, G, 1)
    xc = x - mean
    sq = xc * xc
    if lp != l_valid:
        sq = jnp.where(col < l_valid, sq, 0.0)
    var = jnp.sum(sq, axis=-1, keepdims=True) * (1.0 / l_valid)
    inv = lax.rsqrt(var + EPS)

    # Expand compact (G, Cg) params to (G, Lp): channel c owns cols
    # [c*hw, (c+1)*hw); Cg-1 lane selects, no HBM traffic, no vector int-div.
    def expand(p_ref):
        e = jnp.broadcast_to(p_ref[:, 0:1], (gdim, lp))
        for c in range(1, cg):
            e = jnp.where(col >= c * hw, p_ref[:, c:c + 1], e)
        return e

    gamma_e = expand(g_ref)
    beta_e = expand(b_ref)
    alpha_e = expand(a_ref)

    y = xc * (inv * gamma_e) + beta_e                 # fused affine
    out = jnp.where(y > 0, y, alpha_e * y)            # per-channel PReLU
    o_ref[...] = out.astype(o_ref.dtype)


# -----------------------------------------------------------------------------
# Large-spatial fallback: stats over L-chunks (Welford merge), then apply.
# -----------------------------------------------------------------------------
def _stats_kernel(x_ref, mean_ref, inv_ref, mean_acc, m2_acc, *, l_valid, lc):
    # grid = (N, K); x_ref: (1, G, Lc); mean/inv_ref: (1, G, 1); scratch (G, 1).
    k = pl.program_id(1)

    @pl.when(k == 0)
    def _():
        mean_acc[...] = jnp.zeros_like(mean_acc)
        m2_acc[...] = jnp.zeros_like(m2_acc)

    x = x_ref[0].astype(jnp.float32)                          # (G, Lc)
    col = k * lc + lax.broadcasted_iota(jnp.int32, x.shape, 1)
    valid = col < l_valid
    m = jnp.minimum(lc, l_valid - k * lc).astype(jnp.float32)  # valid here
    cnt = (k * lc).astype(jnp.float32)                         # valid so far

    # Per-chunk two-pass mean / M2, then parallel-variance (Welford) merge --
    # numerically equivalent to a global two-pass variance.
    xm = jnp.where(valid, x, 0.0)
    c_mean = jnp.sum(xm, axis=-1, keepdims=True) / m           # (G, 1)
    d = jnp.where(valid, x - c_mean, 0.0)
    c_m2 = jnp.sum(d * d, axis=-1, keepdims=True)

    run_mean = mean_acc[...]
    run_m2 = m2_acc[...]
    delta = c_mean - run_mean
    tot = cnt + m
    mean_acc[...] = run_mean + delta * (m / tot)
    m2_acc[...] = run_m2 + c_m2 + (delta * delta) * (cnt * m / tot)

    @pl.when(k == pl.num_programs(1) - 1)
    def _():
        var = m2_acc[...] * (1.0 / l_valid)
        mean_ref[0] = mean_acc[...]
        inv_ref[0] = lax.rsqrt(var + EPS)


def _apply_kernel(x_ref, mean_ref, inv_ref, g_ref, b_ref, a_ref, o_ref, *,
                  hw, cg, lc):
    # grid = (N, K); x_ref/o_ref: (1, G, Lc); mean/inv: (1, G, 1); params (G, Cg).
    k = pl.program_id(1)
    x = x_ref[0].astype(jnp.float32)                          # (G, Lc)
    mean = mean_ref[0]
    inv = inv_ref[0]
    col = k * lc + lax.broadcasted_iota(jnp.int32, x.shape, 1)

    def expand(p_ref):
        e = jnp.broadcast_to(p_ref[:, 0:1], x.shape)
        for c in range(1, cg):
            e = jnp.where(col >= c * hw, p_ref[:, c:c + 1], e)
        return e

    gamma_e = expand(g_ref)
    beta_e = expand(b_ref)
    alpha_e = expand(a_ref)

    y = (x - mean) * (inv * gamma_e) + beta_e
    out = jnp.where(y > 0, y, alpha_e * y)
    o_ref[0] = out.astype(o_ref.dtype)


# -----------------------------------------------------------------------------
# Wrapper
# -----------------------------------------------------------------------------
def norm_act(x, gamma, beta, alpha, *,
             resident_limit_bytes=_RESIDENT_LIMIT,
             block_bytes_target=_BLOCK_TARGET,
             chunk_lanes=_CHUNK_LANES):
    """GroupNorm(min(32, C), C) + per-channel PReLU.  x: (N, C, H, W)."""
    N, C, H, W = x.shape
    G = min(32, C)
    assert C % G == 0, "GroupNorm requires C divisible by num_groups"
    Cg = C // G
    HW = H * W
    L = Cg * HW
    itemsize = jnp.dtype(x.dtype).itemsize

    # Compact per-channel params: row g holds the Cg channels of group g.
    g2d = gamma.astype(jnp.float32).reshape(G, Cg)
    b2d = beta.astype(jnp.float32).reshape(G, Cg)
    a2d = alpha.astype(jnp.float32).reshape(G, Cg)

    per_image_work = G * _round_up(L, 128) * 4   # f32 working bytes per image

    if per_image_work <= resident_limit_bytes:
        # -------- resident path: Nb whole images per grid step --------
        Lp = _round_up(L, 128)                   # lane-dense blocks
        xr = x.reshape(N, G, L)
        if Lp != L:
            xr = jnp.pad(xr, ((0, 0), (0, 0), (0, Lp - L)))

        per_image_in = G * Lp * itemsize
        nb = 1
        for d in range(1, N + 1):                # largest divisor under target
            if N % d == 0 and d * per_image_in <= block_bytes_target:
                nb = d
        if N // nb == 1 and N >= 2:
            # Keep >=2 parallel grid steps for v7x's 2 TCs, but only if each
            # step stays >= ~1 MiB (tiny steps just re-add pipeline overhead).
            for d in range(N - 1, 0, -1):
                if N % d == 0 and d * per_image_in >= (1 << 20):
                    nb = d
                    break
        steps = N // nb

        kernel = functools.partial(_resident_kernel, hw=HW, cg=Cg, l_valid=L)
        out = pl.pallas_call(
            kernel,
            out_shape=jax.ShapeDtypeStruct((N, G, Lp), x.dtype),
            grid=(steps,),
            in_specs=[
                pl.BlockSpec((nb, G, Lp), lambda n: (n, 0, 0)),
                pl.BlockSpec((G, Cg), lambda n: (0, 0)),
                pl.BlockSpec((G, Cg), lambda n: (0, 0)),
                pl.BlockSpec((G, Cg), lambda n: (0, 0)),
            ],
            out_specs=pl.BlockSpec((nb, G, Lp), lambda n: (n, 0, 0)),
            compiler_params=pltpu.CompilerParams(
                dimension_semantics=("parallel",)),
        )(xr, g2d, b2d, a2d)
    else:
        # -------- large-spatial fallback: chunk L so VMEM stays bounded ------
        LC = _round_up(min(chunk_lanes, _round_up(L, 128)), 128)
        K = -(-L // LC)
        Lp = K * LC
        xr = x.reshape(N, G, L)
        if Lp != L:
            xr = jnp.pad(xr, ((0, 0), (0, 0), (0, Lp - L)))

        stats = functools.partial(_stats_kernel, l_valid=L, lc=LC)
        mean, inv = pl.pallas_call(
            stats,
            out_shape=(jax.ShapeDtypeStruct((N, G, 1), jnp.float32),
                       jax.ShapeDtypeStruct((N, G, 1), jnp.float32)),
            grid=(N, K),
            in_specs=[pl.BlockSpec((1, G, LC), lambda n, k: (n, 0, k))],
            out_specs=(pl.BlockSpec((1, G, 1), lambda n, k: (n, 0, 0)),
                       pl.BlockSpec((1, G, 1), lambda n, k: (n, 0, 0))),
            scratch_shapes=[pltpu.VMEM((G, 1), jnp.float32),
                            pltpu.VMEM((G, 1), jnp.float32)],
            compiler_params=pltpu.CompilerParams(
                dimension_semantics=("parallel", "arbitrary")),
        )(xr)

        apply_fn = functools.partial(_apply_kernel, hw=HW, cg=Cg, lc=LC)
        out = pl.pallas_call(
            apply_fn,
            out_shape=jax.ShapeDtypeStruct((N, G, Lp), x.dtype),
            grid=(N, K),
            in_specs=[
                pl.BlockSpec((1, G, LC), lambda n, k: (n, 0, k)),
                pl.BlockSpec((1, G, 1), lambda n, k: (n, 0, 0)),
                pl.BlockSpec((1, G, 1), lambda n, k: (n, 0, 0)),
                pl.BlockSpec((G, Cg), lambda n, k: (0, 0)),
                pl.BlockSpec((G, Cg), lambda n, k: (0, 0)),
                pl.BlockSpec((G, Cg), lambda n, k: (0, 0)),
            ],
            out_specs=pl.BlockSpec((1, G, LC), lambda n, k: (n, 0, k)),
            compiler_params=pltpu.CompilerParams(
                dimension_semantics=("parallel", "parallel")),
        )(xr, mean, inv, g2d, b2d, a2d)

    if Lp != L:
        out = out[..., :L]
    return out.reshape(N, C, H, W)


def norm_act_ref(x, gamma, beta, alpha):
    """Pure-JAX reference matching torch GroupNorm + per-channel PReLU."""
    N, C, H, W = x.shape
    G = min(32, C)
    xr = x.reshape(N, G, -1).astype(jnp.float32)
    mean = xr.mean(-1, keepdims=True)
    var = xr.var(-1, keepdims=True)
    xn = ((xr - mean) * lax.rsqrt(var + EPS)).reshape(N, C, H, W)
    y = xn * gamma[None, :, None, None] + beta[None, :, None, None]
    return jnp.where(y > 0, y, alpha[None, :, None, None] * y).astype(x.dtype)


if __name__ == "__main__":
    base_key = jax.random.PRNGKey(0)

    def run_case(case_id, shape, **kwargs):
        N, C, H, W = shape
        kx, kg, kb, ka = jax.random.split(jax.random.fold_in(base_key, case_id), 4)
        x = jax.random.normal(kx, (N, C, H, W), dtype=jnp.float32)
        # Channel-dependent offset so a numerically sloppy variance would fail.
        x = x + 3.0 * jnp.arange(C, dtype=jnp.float32)[None, :, None, None]
        gamma = 1.0 + 0.1 * jax.random.normal(kg, (C,), dtype=jnp.float32)
        beta = 0.1 * jax.random.normal(kb, (C,), dtype=jnp.float32)
        alpha = 0.25 + 0.05 * jax.random.normal(ka, (C,), dtype=jnp.float32)

        out = jax.block_until_ready(norm_act(x, gamma, beta, alpha, **kwargs))
        ref = norm_act_ref(x, gamma, beta, alpha)
        assert out.shape == (N, C, H, W)
        err = float(jnp.max(jnp.abs(out - ref)))
        assert err < 1e-3, (shape, kwargs, err)

    # GroupNorm(32, 64) + PReLU(64): resident path, whole batch in one block.
    run_case(0, (2, 64, 16, 16))
    # Non-multiple-of-128 lane width: exercises lane padding + masking.
    run_case(1, (2, 64, 15, 15))
    # Force the chunked large-spatial path (stats + apply kernels, K=4 chunks).
    run_case(2, (2, 64, 16, 16), resident_limit_bytes=0, chunk_lanes=128)

    print("KERNEL_OK")
</pallas_src>

<mosaic_0001>
module attributes {stable_mosaic.version = 11 : i64} {
  func.func @_resident_kernel(%arg0: i32, %arg1: memref<2x32x512xf32, #tpu.memory_space<vmem>>, %arg2: memref<32x2xf32, #tpu.memory_space<vmem>>, %arg3: memref<32x2xf32, #tpu.memory_space<vmem>>, %arg4: memref<32x2xf32, #tpu.memory_space<vmem>>, %arg5: memref<2x32x512xf32, #tpu.memory_space<vmem>>) attributes {dimension_semantics = [#tpu.dimension_semantics<parallel>], iteration_bounds = array<i64: 1>, scalar_prefetch = 0 : i64, scratch_operands = 0 : i64, tpu.core_type = #tpu.core_type<tc>, window_params = [{transform_indices = @transform_0, window_bounds = array<i64: 2, 32, 512>}, {pipeline_mode = #tpu.pipeline_mode<synchronous>, transform_indices = @transform_1, window_bounds = array<i64: 32, 2>}, {pipeline_mode = #tpu.pipeline_mode<synchronous>, transform_indices = @transform_2, window_bounds = array<i64: 32, 2>}, {pipeline_mode = #tpu.pipeline_mode<synchronous>, transform_indices = @transform_3, window_bounds = array<i64: 32, 2>}, {transform_indices = @transform_4, window_bounds = array<i64: 2, 32, 512>}]} {
    %c0 = arith.constant 0 : index
    %c0_0 = arith.constant 0 : index
    %c0_1 = arith.constant 0 : index
    %0 = vector.load %arg1[%c0, %c0_0, %c0_1] : memref<2x32x512xf32, #tpu.memory_space<vmem>>, vector<2x32x512xf32>
    %1 = tpu.iota {dimensions = array<i32: 1>} : vector<32x512xi32>
    %cst = arith.constant dense<0.000000e+00> : vector<2x32xf32>
    %2 = vector.multi_reduction <add>, %0, %cst [2] : vector<2x32x512xf32> to vector<2x32xf32>
    %3 = vector.shape_cast %2 : vector<2x32xf32> to vector<2x32x1xf32>
    %cst_2 = arith.constant 0.001953125 : f32
    %4 = vector.broadcast %cst_2 : f32 to vector<2x32x1xf32>
    %5 = arith.mulf %3, %4 : vector<2x32x1xf32>
    %6 = vector.broadcast %5 : vector<2x32x1xf32> to vector<2x32x512xf32>
    %7 = arith.subf %0, %6 : vector<2x32x512xf32>
    %8 = arith.mulf %7, %7 : vector<2x32x512xf32>
    %cst_3 = arith.constant dense<0.000000e+00> : vector<2x32xf32>
    %9 = vector.multi_reduction <add>, %8, %cst_3 [2] : vector<2x32x512xf32> to vector<2x32xf32>
    %10 = vector.shape_cast %9 : vector<2x32xf32> to vector<2x32x1xf32>
    %cst_4 = arith.constant 0.001953125 : f32
    %11 = vector.broadcast %cst_4 : f32 to vector<2x32x1xf32>
    %12 = arith.mulf %10, %11 : vector<2x32x1xf32>
    %cst_5 = arith.constant 9.99999974E-6 : f32
    %13 = vector.broadcast %cst_5 : f32 to vector<2x32x1xf32>
    %14 = arith.addf %12, %13 : vector<2x32x1xf32>
    %15 = math.rsqrt %14 : vector<2x32x1xf32>
    %c0_6 = arith.constant 0 : index
    %c0_7 = arith.constant 0 : index
    %16 = vector.load %arg2[%c0_6, %c0_7] : memref<32x2xf32, #tpu.memory_space<vmem>>, vector<32x1xf32>
    %17 = vector.shape_cast %16 : vector<32x1xf32> to vector<32x1xf32>
    %18 = vector.broadcast %17 : vector<32x1xf32> to vector<32x512xf32>
    %c256_i32 = arith.constant 256 : i32
    %19 = vector.broadcast %c256_i32 : i32 to vector<32x512xi32>
    %20 = arith.cmpi sge, %1, %19 : vector<32x512xi32>
    %c0_8 = arith.constant 0 : index
    %c1 = arith.constant 1 : index
    %21 = vector.load %arg2[%c0_8, %c1] : memref<32x2xf32, #tpu.memory_space<vmem>>, vector<32x1xf32>
    %22 = vector.shape_cast %21 : vector<32x1xf32> to vector<32x1xf32>
    %23 = vector.broadcast %22 : vector<32x1xf32> to vector<32x512xf32>
    %24 = arith.select %20, %23, %18 : vector<32x512xi1>, vector<32x512xf32>
    %c0_9 = arith.constant 0 : index
    %c0_10 = arith.constant 0 : index
    %25 = vector.load %arg3[%c0_9, %c0_10] : memref<32x2xf32, #tpu.memory_space<vmem>>, vector<32x1xf32>
    %26 = vector.shape_cast %25 : vector<32x1xf32> to vector<32x1xf32>
    %27 = vector.broadcast %26 : vector<32x1xf32> to vector<32x512xf32>
    %c256_i32_11 = arith.constant 256 : i32
    %28 = vector.broadcast %c256_i32_11 : i32 to vector<32x512xi32>
    %29 = arith.cmpi sge, %1, %28 : vector<32x512xi32>
    %c0_12 = arith.constant 0 : index
    %c1_13 = arith.constant 1 : index
    %30 = vector.load %arg3[%c0_12, %c1_13] : memref<32x2xf32, #tpu.memory_space<vmem>>, vector<32x1xf32>
    %31 = vector.shape_cast %30 : vector<32x1xf32> to vector<32x1xf32>
    %32 = vector.broadcast %31 : vector<32x1xf32> to vector<32x512xf32>
    %33 = arith.select %29, %32, %27 : vector<32x512xi1>, vector<32x512xf32>
    %c0_14 = arith.constant 0 : index
    %c0_15 = arith.constant 0 : index
    %34 = vector.load %arg4[%c0_14, %c0_15] : memref<32x2xf32, #tpu.memory_space<vmem>>, vector<32x1xf32>
    %35 = vector.shape_cast %34 : vector<32x1xf32> to vector<32x1xf32>
    %36 = vector.broadcast %35 : vector<32x1xf32> to vector<32x512xf32>
    %c256_i32_16 = arith.constant 256 : i32
    %37 = vector.broadcast %c256_i32_16 : i32 to vector<32x512xi32>
    %38 = arith.cmpi sge, %1, %37 : vector<32x512xi32>
    %c0_17 = arith.constant 0 : index
    %c1_18 = arith.constant 1 : index
    %39 = vector.load %arg4[%c0_17, %c1_18] : memref<32x2xf32, #tpu.memory_space<vmem>>, vector<32x1xf32>
    %40 = vector.shape_cast %39 : vector<32x1xf32> to vector<32x1xf32>
    %41 = vector.broadcast %40 : vector<32x1xf32> to vector<32x512xf32>
    %42 = arith.select %38, %41, %36 : vector<32x512xi1>, vector<32x512xf32>
    %43 = vector.shape_cast %24 : vector<32x512xf32> to vector<1x32x512xf32>
    %44 = vector.broadcast %15 : vector<2x32x1xf32> to vector<2x32x512xf32>
    %45 = vector.broadcast %43 : vector<1x32x512xf32> to vector<2x32x512xf32>
    %46 = arith.mulf %44, %45 : vector<2x32x512xf32>
    %47 = arith.mulf %7, %46 : vector<2x32x512xf32>
    %48 = vector.shape_cast %33 : vector<32x512xf32> to vector<1x32x512xf32>
    %49 = vector.broadcast %48 : vector<1x32x512xf32> to vector<2x32x512xf32>
    %50 = arith.addf %47, %49 : vector<2x32x512xf32>
    %cst_19 = arith.constant 0.000000e+00 : f32
    %51 = vector.broadcast %cst_19 : f32 to vector<2x32x512xf32>
    %52 = arith.cmpf ogt, %50, %51 : vector<2x32x512xf32>
    %53 = vector.shape_cast %42 : vector<32x512xf32> to vector<1x32x512xf32>
    %54 = vector.broadcast %53 : vector<1x32x512xf32> to vector<2x32x512xf32>
    %55 = arith.mulf %54, %50 : vector<2x32x512xf32>
    %56 = arith.select %52, %50, %55 : vector<2x32x512xi1>, vector<2x32x512xf32>
    %c0_20 = arith.constant 0 : index
    %c0_21 = arith.constant 0 : index
    %c0_22 = arith.constant 0 : index
    %57 = vector.load %arg5[%c0_20, %c0_21, %c0_22] : memref<2x32x512xf32, #tpu.memory_space<vmem>>, vector<2x32x512xf32>
    tpu.vector_store %arg5[%c0_20, %c0_21, %c0_22], %56 {strides = array<i32>} : memref<2x32x512xf32, #tpu.memory_space<vmem>>, vector<2x32x512xf32>,
    return
  }
  func.func @transform_0(%arg0: i32) -> (i32, i32, i32) {
    %c0_i32 = arith.constant 0 : i32
    %c0_i32_0 = arith.constant 0 : i32
    %c0_i32_1 = arith.constant 0 : i32
    return %arg0, %c0_i32, %c0_i32_0 : i32, i32, i32
  }
  func.func @transform_1(%arg0: i32) -> (i32, i32) {
    %c0_i32 = arith.constant 0 : i32
    %c0_i32_0 = arith.constant 0 : i32
    %c0_i32_1 = arith.constant 0 : i32
    return %c0_i32, %c0_i32_0 : i32, i32
  }
  func.func @transform_2(%arg0: i32) -> (i32, i32) {
    %c0_i32 = arith.constant 0 : i32
    %c0_i32_0 = arith.constant 0 : i32
    %c0_i32_1 = arith.constant 0 : i32
    return %c0_i32, %c0_i32_0 : i32, i32
  }
  func.func @transform_3(%arg0: i32) -> (i32, i32) {
    %c0_i32 = arith.constant 0 : i32
    %c0_i32_0 = arith.constant 0 : i32
    %c0_i32_1 = arith.constant 0 : i32
    return %c0_i32, %c0_i32_0 : i32, i32
  }
  func.func @transform_4(%arg0: i32) -> (i32, i32, i32) {
    %c0_i32 = arith.constant 0 : i32
    %c0_i32_0 = arith.constant 0 : i32
    %c0_i32_1 = arith.constant 0 : i32
    return %arg0, %c0_i32, %c0_i32_0 : i32, i32, i32
  }
}

</mosaic_0001>

<bundles_post_ra>
// kernel: tpu_custom_call.1
= control target key start
LH: loop header
LB: loop body
LE: loop exit
PB: predicated region body
PF: predicated region fallthrough
CT: control target
= control target key end

     0   :  { %9 = vsyncpa [#allocation3], 0  ;;  %s1266_s0 = inlined_call_operand.hbm [shape: f32[2,32,512], index: 0, kind: input, shape index: {}]   ;;  %s1267_s1 = inlined_call_operand.vmem [shape: f32[32,2], index: 1, kind: input, shape index: {}]   ;;  %s1268_s2 = inlined_call_operand.vmem [shape: f32[32,2], index: 2, kind: input, shape index: {}]   ;;  %s1269_s3 = inlined_call_operand.vmem [shape: f32[32,2], index: 3, kind: input, shape index: {}]   ;;  %s1270_s4 = inlined_call_operand.hbm [shape: f32[2,32,512], index: 4, kind: output, shape index: {}]  }
   0x1   :  { %10 = vsyncpa [#allocation4], 0  ;;  %s736_s15 = smov [#allocation2]   ;;  %s688_s19 = scalar_lea.hbm %s1266_s0, 4096 }
   0x2   :  { %s16_s16 = sshll.u32 %s736_s15, 4  ;;  %p689_p0 = scmp.ne.s32.totalorder %s1266_s0, %s688_s19  ;;  %s17_s16 = int_to_ptr.vmem [resolvable:$true] %s16_s16 }
   0x3   :  { %p692_p1 = scmp.lt.u32.totalorder %s688_s19, %s1266_s0 }
   0x5   :  { %p694_p2 = pnand %p692_p1, %p689_p0 }
   0x7   :  { %697 = shalt.err (!%p694_p2)
}
   0x8   :  { %s698_s24 = scalar_lea.vmem %s17_s16, 4096  ;;  %p703_p4 = scmp.lt.s32.totalorder %s17_s16, %s17_s16 }
   0x9   :  { %p699_p3 = scmp.ne.s32.totalorder %s17_s16, %s698_s24  ;;  %p704_p5 = scmp.lt.s32.totalorder %s698_s24, %s698_s24 }
   0xb   :  { %p705_p6 = por %p704_p5, %p703_p4 }
   0xd   :  { %p706_p7 = pnand %p705_p6, %p699_p3 }
   0xf   :  { %709 = shalt.err (!%p706_p7)
}
  0x10   :  { %s737_s25 = smov 512   ;;  %s738_s26 = smov 32  }
  0x11   :  { %22 = dma.hbm_to_vmem [thread:$0]  %s1266_s0, 4096, %s17_s16, [#allocation3], %s737_s25, %s737_s25, %s738_s26  }
  0x12   :  { %732 = dma.done.wait [#allocation3], 4096  }
  0x13   :  { %733 = vsyncadd [#allocation3], 4294963200  ;;  %v739_v0 = vmov 0   ;;  %v784_v1 = vld [vmem:[#allocation2 + $0x40] sm:$0xff]  ;;  %v786_v2 = vld [vmem:[#allocation2 + $0x48] sm:$0xff]  ;;  %v740_v62 = vmov 1  }
  0x14   :  { %665 = vset.pattern.permute.xlu1 %v739_v0  ;;  %664 = vset.pattern.permute.xlu0 %v739_v0  ;;  %v788_v3 = vld [vmem:[#allocation2 + $0x50] sm:$0xff]  ;;  %v79_v4 = vadd.f32 %v786_v2, %v784_v1  ;;  %v792_v5 = vld [vmem:[#allocation2] sm:$0xff]  ;;  %v794_v6 = vld [vmem:[#allocation2 + $0x8] sm:$0xff] }
  0x15   :  { %v796_v7 = vld [vmem:[#allocation2 + $0x58] sm:$0xff]  ;;  %v798_v8 = vld [vmem:[#allocation2 + $0x10] sm:$0xff]  ;;  %v69_v9 = vadd.f32 %v794_v6, %v792_v5  ;;  %v802_v10 = vld [vmem:[#allocation2 + $0x60] sm:$0xff] }
  0x16   :  { %v80_v11 = vadd.f32 %v79_v4, %v788_v3  ;;  %v805_v12 = vld [vmem:[#allocation2 + $0x18] sm:$0xff]  ;;  %v807_v13 = vld [vmem:[#allocation2 + $0x68] sm:$0xff]  ;;  %v809_v14 = vld [vmem:[#allocation2 + $0x70] sm:$0xff] }
  0x17   :  { %v70_v15 = vadd.f32 %v69_v9, %v798_v8  ;;  %v84_v16 = vadd.f32 %v807_v13, %v802_v10  ;;  %v814_v17 = vld [vmem:[#allocation2 + $0x20] sm:$0xff]  ;;  %v816_v18 = vld [vmem:[#allocation2 + $0x28] sm:$0xff]  ;;  %v818_v19 = vld [vmem:[#allocation2 + $0x30] sm:$0xff] }
  0x18   :  { %v81_v20 = vadd.f32 %v80_v11, %v796_v7  ;;  %v821_v21 = vld [vmem:[#allocation2 + $0x78] sm:$0xff]  ;;  %v74_v22 = vadd.f32 %v816_v18, %v814_v17  ;;  %v825_v23 = vld [vmem:[#allocation2 + $0xa0] sm:$0xff]  ;;  %v827_v24 = vld [vmem:[#allocation2 + $0xa8] sm:$0xff] }
  0x19   :  { %v71_v25 = vadd.f32 %v70_v15, %v805_v12  ;;  %v85_v26 = vadd.f32 %v84_v16, %v809_v14  ;;  %v831_v27 = vld [vmem:[#allocation2 + $0x38] sm:$0xff]  ;;  %v833_v28 = vld [vmem:[#allocation2 + $0xb0] sm:$0xff]  ;;  %v94_v29 = vadd.f32 %v827_v24, %v825_v23  ;;  %v837_v30 = vld [vmem:[#allocation2 + $0x80] sm:$0xff] }
  0x1a   :  { %82 = vadd.xlane.f32.xlu1 %v81_v20  ;;  %v75_v31 = vadd.f32 %v74_v22, %v818_v19  ;;  %v840_v32 = vld [vmem:[#allocation2 + $0xb8] sm:$0xff]  ;;  %v842_v33 = vld [vmem:[#allocation2 + $0x88] sm:$0xff]  ;;  %v844_v34 = vld [vmem:[#allocation2 + $0x90] sm:$0xff] }
  0x1b   :  { %72 = vadd.xlane.f32.xlu0 %v71_v25  ;;  %v86_v35 = vadd.f32 %v85_v26, %v821_v21  ;;  %v95_v36 = vadd.f32 %v94_v29, %v833_v28  ;;  %v848_v37 = vld [vmem:[#allocation2 + $0x98] sm:$0xff]  ;;  %v89_v38 = vadd.f32 %v842_v33, %v837_v30  ;;  %v852_v39 = vld [vmem:[#allocation2 + $0xc0] sm:$0xff]  ;;  %v854_v40 = vld [vmem:[#allocation2 + $0xc8] sm:$0xff] }
  0x1c   :  { %v76_v41 = vadd.f32 %v75_v31, %v831_v27  ;;  %v857_v42 = vld [vmem:[#allocation2 + $0xd0] sm:$0xff]  ;;  %v99_v43 = vadd.f32 %v854_v40, %v852_v39  ;;  %v861_v44 = vld [vmem:[#allocation2 + $0xe0] sm:$0xff]  ;;  %v863_v45 = vld [vmem:[#allocation2 + $0xe8] sm:$0xff] }
  0x1d   :  { %v90_v46 = vadd.f32 %v89_v38, %v844_v34  ;;  %v866_v47 = vld [vmem:[#allocation2 + $0xf0] sm:$0xff]  ;;  %v104_v48 = vadd.f32 %v863_v45, %v861_v44  ;;  %v96_v49 = vadd.f32 %v95_v36, %v840_v32  ;;  %v873_v52 = vld [vmem:[#allocation2 + $0xf8] sm:$0xff]  ;;  %v246_v57 = vld [vmem:[%s1267_s1 + $0x8] sm:$0xff] }
  0x1e   :  { %87 = vadd.xlane.f32.xlu1 %v86_v35  ;;  %v100_v51 = vadd.f32 %v99_v43, %v857_v42  ;;  %v876_v54 = vld [vmem:[#allocation2 + $0xd8] sm:$0xff]  ;;  %v247_v58 = vld [vmem:[%s1267_s1 + $0x10] sm:$0xff]  ;;  %v245_v60 = vld [vmem:[%s1267_s1] sm:$0xff] }
  0x1f   :  { %77 = vadd.xlane.f32.xlu0 %v76_v41  ;;  %v91_v50 = vadd.f32 %v90_v46, %v848_v37  ;;  %v105_v53 = vadd.f32 %v104_v48, %v866_v47  ;;  %v248_v59 = vld [vmem:[%s1267_s1 + $0x18] sm:$0xff]  ;;  %v306_v61 = vld [vmem:[%s1268_s2 + $0x8] sm:$0xff]  ;;  %v361_v4 = vld [vmem:[%s1269_s3] sm:$0xff] }
  0x20   :  { %v101_v56 = vadd.f32 %v100_v51, %v876_v54  ;;  %v308_v63 = vld [vmem:[%s1268_s2 + $0x18] sm:$0xff]  ;;  %v305_v11 = vld [vmem:[%s1268_s2] sm:$0xff]  ;;  %v307_v15 = vld [vmem:[%s1268_s2 + $0x10] sm:$0xff]  ;;  %s741_s2 = smov [#allocation5]  }
  0x21   :  { %v106_v55 = vadd.f32 %v105_v53, %v873_v52  ;;  %v904_v9 = vld [vmem:[%s1269_s3 + $0x18] sm:$0xff]  ;;  %v917_v16 = vld [vmem:[%s1269_s3 + $0x8] sm:$0xff]  ;;  %v924_v20 = vld [vmem:[%s1269_s3 + $0x10] sm:$0xff]  ;;  %s646_s3 = sshll.u32 %s741_s2, 4  ;;  %s647_s3 = int_to_ptr.vmem [resolvable:$true] %s646_s3 }
  0x22   :  { %97 = vadd.xlane.f32.xlu1 %v96_v49  ;;  %s710_s27 = scalar_lea.vmem %s647_s3, 4096  ;;  %p715_p9 = scmp.lt.s32.totalorder %s647_s3, %s647_s3 }
  0x23   :  { %92 = vadd.xlane.f32.xlu0 %v91_v50  ;;  %p711_p8 = scmp.ne.s32.totalorder %s647_s3, %s710_s27  ;;  %p716_p10 = scmp.lt.s32.totalorder %s710_s27, %s710_s27 }
  0x25   :  { %p717_p11 = por %p716_p10, %p715_p9 }
  0x26   :  { %107 = vadd.xlane.f32.xlu1 %v106_v55 }
  0x27   :  { %102 = vadd.xlane.f32.xlu0 %v101_v56  ;;  %p718_p12 = pnand %p717_p11, %p711_p8 }
  0x37   :  { %256 = vperm.xlu1 %665, %v246_v57  }
  0x3b   :  { %261 = vperm.xlu1 %665, %v247_v58  }
  0x3d   :  { %251 = vperm.xlu0 %664, %v245_v60  }
  0x3f   :  { %266 = vperm.xlu1 %665, %v248_v59  }
  0x41   :  { %316 = vperm.xlu0 %664, %v306_v61  }
  0x43   :  { %666 = vset.pattern.permute.xlu1 %v740_v62 }
  0x44   :  { %274 = vperm.xlu1 %666, %v245_v60  }
  0x45   :  { %326 = vperm.xlu0 %664, %v308_v63  }
  0x48   :  { %278 = vperm.xlu1 %666, %v246_v57  }
  0x49   :  { %367 = vperm.xlu0 %664, %v361_v4  }
  0x4c   :  { %282 = vperm.xlu1 %666, %v247_v58  }
  0x4d   :  { %382 = vperm.xlu0 %664, %v904_v9  }
  0x50   :  { %286 = vperm.xlu1 %666, %v248_v59  }
  0x51   :  { %670 = vset.pattern.permute.xlu0 %v740_v62 }
  0x52   :  { %334 = vperm.xlu0 %670, %v306_v61  }
  0x54   :  { %667 = vset.pattern.permute.xlu1 %v739_v0 }
  0x55   :  { %311 = vperm.xlu1 %667, %v305_v11  }
  0x59   :  { %321 = vperm.xlu1 %667, %v307_v15  }
  0x5d   :  { %668 = vset.pattern.permute.xlu1 %v740_v62 }
  0x5e   :  { %330 = vperm.xlu1 %668, %v305_v11  }
  0x62   :  { %338 = vperm.xlu1 %668, %v307_v15  }
  0x66   :  { %342 = vperm.xlu1 %668, %v308_v63  }
  0x6a   :  { %669 = vset.pattern.permute.xlu1 %v739_v0 }
  0x6b   :  { %372 = vperm.xlu1 %669, %v917_v16  }
  0x6f   :  { %377 = vperm.xlu1 %669, %v924_v20  }
  0x73   :  { %671 = vset.pattern.permute.xlu1 %v740_v62 }
  0x74   :  { %386 = vperm.xlu1 %671, %v361_v4  }
  0xa7   :  { %v83_v22 = vpop.xlane.xlu1 %82 }
  0xa8   :  { %v111_v25 = vmul.f32 0.001953125, %v83_v22  ;;  %v73_v26 = vpop.xlane.xlu0 %72 }
  0xa9   :  { %v109_v29 = vmul.f32 0.001953125, %v73_v26 }
  0xaa   :  { %v928_v31 = vsub.f32 %v784_v1, %v111_v25  ;;  %v931_v0 = vsub.f32 %v786_v2, %v111_v25  ;;  %v934_v35 = vsub.f32 %v788_v3, %v111_v25  ;;  %v937_v36 = vsub.f32 %v796_v7, %v111_v25 }
  0xab   :  { %v940_v38 = vsub.f32 %v792_v5, %v109_v29  ;;  %v943_v41 = vsub.f32 %v794_v6, %v109_v29  ;;  %v88_v43 = vpop.xlane.xlu1 %87  ;;  %v946_v46 = vsub.f32 %v798_v8, %v109_v29  ;;  %v949_v1 = vsub.f32 %v805_v12, %v109_v29 }
  0xac   :  { %v112_v2 = vmul.f32 0.001953125, %v88_v43  ;;  %v78_v48 = vpop.xlane.xlu0 %77  ;;  %v157_v3 = vmul.f32 %v928_v31, %v928_v31  ;;  %v158_v7 = vmul.f32 %v931_v0, %v931_v0  ;;  %v159_v5 = vmul.f32 %v934_v35, %v934_v35 }
  0xad   :  { %v110_v6 = vmul.f32 0.001953125, %v78_v48  ;;  %v149_v49 = vmul.f32 %v940_v38, %v940_v38  ;;  %v150_v8 = vmul.f32 %v943_v41, %v943_v41  ;;  %v151_v12 = vmul.f32 %v946_v46, %v946_v46 }
  0xae   :  { %v964_v50 = vsub.f32 %v802_v10, %v112_v2  ;;  %v967_v51 = vsub.f32 %v807_v13, %v112_v2  ;;  %v152_v53 = vmul.f32 %v949_v1, %v949_v1  ;;  %v160_v55 = vmul.f32 %v937_v36, %v937_v36 }
  0xaf   :  { %v974_v56 = vsub.f32 %v814_v17, %v110_v6  ;;  %v977_v57 = vsub.f32 %v816_v18, %v110_v6  ;;  %v98_v58 = vpop.xlane.xlu1 %97  ;;  %v181_v59 = vadd.f32 %v150_v8, %v149_v49  ;;  %v191_v60 = vadd.f32 %v158_v7, %v157_v3 }
  0xb0   :  { %v114_v10 = vmul.f32 0.001953125, %v98_v58  ;;  %v93_v61 = vpop.xlane.xlu0 %92  ;;  %v980_v13 = vsub.f32 %v818_v19, %v110_v6  ;;  %v983_v62 = vsub.f32 %v831_v27, %v110_v6  ;;  %v986_v63 = vsub.f32 %v809_v14, %v112_v2 }
  0xb1   :  { %v113_v4 = vmul.f32 0.001953125, %v93_v61  ;;  %v182_v17 = vadd.f32 %v181_v59, %v151_v12  ;;  %v192_v11 = vadd.f32 %v191_v60, %v159_v5  ;;  %v153_v18 = vmul.f32 %v974_v56, %v974_v56 }
  0xb2   :  { %1280 = vst [vmem:[#allocation8_spill] sm:$0xff] %v986_v63  ;;  %v991_v15 = vsub.f32 %v825_v23, %v114_v10  ;;  %v994_v22 = vsub.f32 %v827_v24, %v114_v10  ;;  %v154_v19 = vmul.f32 %v977_v57, %v977_v57  ;;  %v155_v27 = vmul.f32 %v980_v13, %v980_v13 }
  0xb3   :  { %v1001_v14 = vsub.f32 %v837_v30, %v113_v4  ;;  %v1004_v25 = vsub.f32 %v842_v33, %v113_v4  ;;  %v183_v26 = vadd.f32 %v182_v17, %v152_v53  ;;  %v193_v29 = vadd.f32 %v192_v11, %v160_v55 }
  0xb4   :  { %v103_v43 = vpop.xlane.xlu0 %102  ;;  %v156_v23 = vmul.f32 %v983_v62, %v983_v62  ;;  %v186_v24 = vadd.f32 %v154_v19, %v153_v18  ;;  %v1009_v48 = vsub.f32 %v821_v21, %v112_v2  ;;  %v161_v3 = vmul.f32 %v964_v50, %v964_v50 }
  0xb5   :  { %v115_v7 = vmul.f32 0.001953125, %v103_v43  ;;  %184 = vadd.xlane.f32.xlu0 %v183_v26  ;;  %v162_v30 = vmul.f32 %v967_v51, %v967_v51  ;;  %v163_v33 = vmul.f32 %v986_v63, %v986_v63  ;;  %v1018_v5 = vsub.f32 %v844_v34, %v113_v4 }
  0xb6   :  { %1281 = vst [vmem:[#allocation9_spill] sm:$0xff] %v1009_v48  ;;  %v187_v6 = vadd.f32 %v186_v24, %v155_v27  ;;  %v164_v49 = vmul.f32 %v1009_v48, %v1009_v48  ;;  %v1023_v21 = vsub.f32 %v848_v37, %v113_v4  ;;  %v165_v2 = vmul.f32 %v1001_v14, %v1001_v14 }
  0xb7   :  { %v1028_v8 = vsub.f32 %v852_v39, %v115_v7  ;;  %v1031_v12 = vsub.f32 %v854_v40, %v115_v7  ;;  %v196_v53 = vadd.f32 %v162_v30, %v161_v3  ;;  %v166_v34 = vmul.f32 %v1004_v25, %v1004_v25  ;;  %v108_v30 = vpop.xlane.xlu1 %107 }
  0xb8   :  { %v188_v55 = vadd.f32 %v187_v6, %v156_v23  ;;  %v167_v58 = vmul.f32 %v1018_v5, %v1018_v5  ;;  %v168_v37 = vmul.f32 %v1023_v21, %v1023_v21  ;;  %v1040_v59 = vsub.f32 %v833_v28, %v114_v10 }
  0xb9   :  { %194 = vadd.xlane.f32.xlu0 %v193_v29  ;;  %v197_v39 = vadd.f32 %v196_v53, %v163_v33  ;;  %v201_v60 = vadd.f32 %v166_v34, %v165_v2  ;;  %v1043_v40 = vsub.f32 %v840_v32, %v114_v10  ;;  %v169_v61 = vmul.f32 %v991_v15, %v991_v15 }
  0xba   :  { %189 = vadd.xlane.f32.xlu1 %v188_v55  ;;  %v170_v4 = vmul.f32 %v994_v22, %v994_v22  ;;  %v171_v17 = vmul.f32 %v1040_v59, %v1040_v59  ;;  %v1052_v11 = vsub.f32 %v857_v42, %v115_v7  ;;  %v1055_v28 = vsub.f32 %v876_v54, %v115_v7 }
  0xbb   :  { %v198_v18 = vadd.f32 %v197_v39, %v164_v49  ;;  %v202_v19 = vadd.f32 %v201_v60, %v167_v58  ;;  %v173_v32 = vmul.f32 %v1028_v8, %v1028_v8  ;;  %v172_v10 = vmul.f32 %v1043_v40, %v1043_v40  ;;  %v1089_v58 = vpop.permute.xlu1 %256 }
  0xbc   :  { %v206_v27 = vadd.f32 %v170_v4, %v169_v61  ;;  %v174_v26 = vmul.f32 %v1031_v12, %v1031_v12  ;;  %v175_v29 = vmul.f32 %v1052_v11, %v1052_v11  ;;  %v176_v54 = vmul.f32 %v1055_v28, %v1055_v28 }
  0xbd   :  { %v203_v42 = vadd.f32 %v202_v19, %v168_v37  ;;  %v116_v33 = vmul.f32 0.001953125, %v108_v30 }
  0xbe   :  { %199 = vadd.xlane.f32.xlu1 %v198_v18  ;;  %v207_v43 = vadd.f32 %v206_v27, %v171_v17  ;;  %v211_v23 = vadd.f32 %v174_v26, %v173_v32  ;;  %v1106_v18 = vpop.permute.xlu0 %251 }
  0xbf   :  { %204 = vadd.xlane.f32.xlu0 %v203_v42  ;;  %v1070_v6 = vsub.f32 %v861_v44, %v116_v33  ;;  %v1073_v49 = vsub.f32 %v863_v45, %v116_v33  ;;  %v1076_v2 = vsub.f32 %v866_v47, %v116_v33  ;;  %v1091_v37 = vpop.permute.xlu1 %261 }
  0xc0   :  { %v208_v24 = vadd.f32 %v207_v43, %v172_v10  ;;  %v212_v3 = vadd.f32 %v211_v23, %v175_v29 }
  0xc1   :  { %1282 = vst [vmem:[#allocation10_spill] sm:$0xff] %v1070_v6  ;;  %1283 = vst [vmem:[#allocation11_spill] sm:$0xff] %v1073_v49  ;;  %v177_v53 = vmul.f32 %v1070_v6, %v1070_v6  ;;  %v178_v34 = vmul.f32 %v1073_v49, %v1073_v49 }
  0xc2   :  { %209 = vadd.xlane.f32.xlu1 %v208_v24  ;;  %v213_v7 = vadd.f32 %v212_v3, %v176_v54  ;;  %1284 = vst [vmem:[#allocation12_spill] sm:$0xff] %v1076_v2  ;;  %v1110_v32 = vpop.permute.xlu0 %316 }
  0xc3   :  { %v216_v44 = vadd.f32 %v178_v34, %v177_v53  ;;  %v1093_v39 = vpop.permute.xlu1 %266 }
  0xc4   :  { %214 = vadd.xlane.f32.xlu0 %v213_v7 }
  0xc6   :  { %v1114_v27 = vpop.permute.xlu0 %326 }
  0xc7   :  { %v1095_v60 = vpop.permute.xlu1 %274 }
  0xd3   :  { %394 = vperm.xlu1 %671, %v924_v20   ;;  %v1083_v20 = vsub.f32 %v873_v52, %v116_v33  ;;  %v1098_v52 = vpop.permute.xlu1 %278 }
  0xd5   :  { %1285 = vst [vmem:[#allocation13_spill] sm:$0xff] %v1083_v20  ;;  %v180_v45 = vmul.f32 %v1083_v20, %v1083_v20 }
  0xd7   :  { %v1100_v61 = vpop.permute.xlu1 %282 }
  0xda   :  { %390 = vperm.xlu0 %670, %v917_v16   ;;  %v179_v16 = vmul.f32 %v1076_v2, %v1076_v2 }
  0xdb   :  { %v1102_v4 = vpop.permute.xlu1 %286 }
  0xdc   :  { %v217_v55 = vadd.f32 %v216_v44, %v179_v16  ;;  %1286 = vst [vmem:[#allocation14_spill] sm:$0xff] %v1102_v4 }
  0xde   :  { %v218_v47 = vadd.f32 %v217_v55, %v180_v45 }
  0xdf   :  { %v1104_v17 = vpop.permute.xlu1 %311 }
  0xe3   :  { %v1108_v19 = vpop.permute.xlu1 %321 }
  0xe7   :  { %v1112_v10 = vpop.permute.xlu1 %330 }
  0xeb   :  { %v1116_v26 = vpop.permute.xlu1 %338 }
  0xef   :  { %v1120_v29 = vpop.permute.xlu1 %342 }
  0xf0   :  { %1287 = vst [vmem:[#allocation15_spill] sm:$0xff] %v1120_v29 }
  0xf3   :  { %v1124_v43 = vpop.permute.xlu1 %372 }
  0xf7   :  { %219 = vadd.xlane.f32.xlu1 %v218_v47  ;;  %v1128_v23 = vpop.permute.xlu1 %377 }
  0xfb   :  { %v1130_v3 = vpop.permute.xlu1 %386 }
 0x108   :  { %398 = vperm.xlu1 %671, %v904_v9   ;;  %v1118_v9 = vpop.permute.xlu0 %367 }
 0x10c   :  { %v1122_v42 = vpop.permute.xlu0 %382 }
 0x110   :  { %v1126_v54 = vpop.permute.xlu0 %334 }
 0x111   :  { %1288 = vst [vmem:[#allocation16_spill] sm:$0xff] %v1126_v54 }
 0x142   :  { %v185_v24 = vpop.xlane.xlu0 %184 }
 0x143   :  { %v221_v7 = vmul.f32 0.001953125, %v185_v24 }
 0x145   :  { %v229_v30 = vadd.f32 1e-05, %v221_v7 }
 0x146   :  { %v195_v33 = vpop.xlane.xlu0 %194 }
 0x147   :  { %672 = vrsqrt.f32 %v229_v30  ;;  %v190_v53 = vpop.xlane.xlu1 %189  ;;  %v223_v34 = vmul.f32 0.001953125, %v195_v33 }
 0x148   :  { %v222_v16 = vmul.f32 0.001953125, %v190_v53 }
 0x149   :  { %v231_v44 = vadd.f32 1e-05, %v223_v34 }
 0x14a   :  { %v230_v45 = vadd.f32 1e-05, %v222_v16 }
 0x14b   :  { %674 = vrsqrt.f32 %v231_v44  ;;  %v200_v55 = vpop.xlane.xlu1 %199 }
 0x14c   :  { %676 = vrsqrt.f32 %v230_v45  ;;  %v224_v47 = vmul.f32 0.001953125, %v200_v55  ;;  %v205_v20 = vpop.xlane.xlu0 %204 }
 0x14d   :  { %v225_v2 = vmul.f32 0.001953125, %v205_v20 }
 0x14e   :  { %v232_v49 = vadd.f32 1e-05, %v224_v47 }
 0x14f   :  { %v233_v6 = vadd.f32 1e-05, %v225_v2  ;;  %v210_v29 = vpop.xlane.xlu1 %209 }
 0x150   :  { %678 = vrsqrt.f32 %v232_v49  ;;  %v226_v48 = vmul.f32 0.001953125, %v210_v29 }
 0x151   :  { %v673_v24 = vpop.eup %672  ;;  %680 = vrsqrt.f32 %v233_v6  ;;  %v215_v7 = vpop.xlane.xlu0 %214 }
 0x152   :  { %v417_v30 = vmul.f32 %v673_v24, %v1106_v18  ;;  %v419_v33 = vmul.f32 %v673_v24, %v1095_v60  ;;  %v234_v53 = vadd.f32 1e-05, %v226_v48  ;;  %v227_v34 = vmul.f32 0.001953125, %v215_v7 }
 0x154   :  { %v449_v16 = vmul.f32 %v417_v30, %v940_v38  ;;  %v450_v44 = vmul.f32 %v417_v30, %v943_v41  ;;  %v451_v20 = vmul.f32 %v419_v33, %v946_v46  ;;  %v452_v2 = vmul.f32 %v419_v33, %v949_v1 }
 0x155   :  { %v675_v45 = vpop.eup %674  ;;  %682 = vrsqrt.f32 %v234_v53  ;;  %v235_v49 = vadd.f32 1e-05, %v227_v34 }
 0x156   :  { %v1138_v29 = vpop.eup %676  ;;  %v481_v6 = vadd.f32 %v449_v16, %v1104_v17  ;;  %v482_v55 = vadd.f32 %v450_v44, %v1104_v17  ;;  %v483_v48 = vadd.f32 %v451_v20, %v1112_v10  ;;  %v484_v47 = vadd.f32 %v452_v2, %v1112_v10 }
 0x157   :  { %v421_v38 = vmul.f32 %v1138_v29, %v1089_v58  ;;  %v425_v41 = vmul.f32 %v675_v45, %v1091_v37  ;;  %v1148_v46 = vmul.f32 %v675_v45, %v1100_v61  ;;  %684 = vrsqrt.f32 %v235_v49 }
 0x158   :  { %vm513_vm0 = vcmp.gt.f32.partialorder %v481_v6, 0.0  ;;  %vm514_vm1 = vcmp.gt.f32.partialorder %v482_v55, 0.0  ;;  %vm515_vm2 = vcmp.gt.f32.partialorder %v483_v48, 0.0  ;;  %vm516_vm3 = vcmp.gt.f32.partialorder %v484_v47, 0.0 }
 0x159   :  { %v545_v1 = vmul.f32 %v481_v6, %v1118_v9  ;;  %v546_v24 = vmul.f32 %v482_v55, %v1118_v9  ;;  %v547_v7 = vmul.f32 %v483_v48, %v1130_v3  ;;  %v548_v30 = vmul.f32 %v484_v47, %v1130_v3 }
 0x15a   :  { %v1154_v33 = vpop.eup %678  ;;  %v453_v53 = vmul.f32 %v421_v38, %v974_v56  ;;  %v454_v34 = vmul.f32 %v421_v38, %v977_v57  ;;  %v457_v16 = vmul.f32 %v425_v41, %v928_v31  ;;  %v458_v44 = vmul.f32 %v425_v41, %v931_v0 }
 0x15b   :  { %v681_v20 = vpop.eup %680  ;;  %v577_v2 = vsel %vm513_vm0, %v481_v6, %v545_v1  ;;  %v578_v45 = vsel %vm514_vm1, %v482_v55, %v546_v24  ;;  %v579_v49 = vsel %vm515_vm2, %v483_v48, %v547_v7  ;;  %v580_v63 = vsel %vm516_vm3, %v484_v47, %v548_v30 }
 0x15c   :  { %609 = vst [vmem:[#allocation5] sm:$0xff] %v577_v2  ;;  %610 = vst [vmem:[#allocation5 + $0x8] sm:$0xff] %v578_v45  ;;  %v485_v4 = vadd.f32 %v453_v53, %v1110_v32  ;;  %v486_v54 = vadd.f32 %v454_v34, %v1110_v32  ;;  %v489_v56 = vadd.f32 %v457_v16, %v1108_v19 }
 0x15d   :  { %611 = vst [vmem:[#allocation5 + $0x10] sm:$0xff] %v579_v49  ;;  %612 = vst [vmem:[#allocation5 + $0x18] sm:$0xff] %v580_v63  ;;  %v490_v57 = vadd.f32 %v458_v44, %v1108_v19  ;;  %v429_v31 = vmul.f32 %v1154_v33, %v1093_v39  ;;  %v433_v0 = vmul.f32 %v681_v20, %v1106_v18 }
 0x15e   :  { %v435_v6 = vmul.f32 %v681_v20, %v1095_v60  ;;  %v1170_v55 = vmul.f32 %v1148_v46, %v934_v35  ;;  %vm517_vm4 = vcmp.gt.f32.partialorder %v485_v4, 0.0  ;;  %vm518_vm5 = vcmp.gt.f32.partialorder %v486_v54, 0.0 }
 0x15f   :  { %v549_v63 = vmul.f32 %v485_v4, %v1124_v43  ;;  %v550_v48 = vmul.f32 %v486_v54, %v1124_v43  ;;  %v1174_v47 = vpop.eup %682  ;;  %vm521_vm6 = vcmp.gt.f32.partialorder %v489_v56, 0.0  ;;  %vm522_vm7 = vcmp.gt.f32.partialorder %v490_v57, 0.0 }
 0x160   :  { %v553_v38 = vmul.f32 %v489_v56, %v1128_v23  ;;  %v554_v18 = vmul.f32 %v490_v57, %v1128_v23  ;;  %v461_v1 = vmul.f32 %v429_v31, %v964_v50  ;;  %v462_v35 = vmul.f32 %v429_v31, %v967_v51 }
 0x161   :  { %v581_v41 = vsel %vm517_vm4, %v485_v4, %v549_v63  ;;  %v582_v60 = vsel %vm518_vm5, %v486_v54, %v550_v48  ;;  %v685_v24 = vpop.eup %684  ;;  %v465_v53 = vmul.f32 %v433_v0, %v1001_v14  ;;  %v466_v34 = vmul.f32 %v433_v0, %v1004_v25 }
 0x162   :  { %613 = vst [vmem:[#allocation5 + $0x20] sm:$0xff] %v581_v41  ;;  %614 = vst [vmem:[#allocation5 + $0x28] sm:$0xff] %v582_v60  ;;  %v585_v7 = vsel %vm521_vm6, %v489_v56, %v553_v38  ;;  %v586_v30 = vsel %vm522_vm7, %v490_v57, %v554_v18  ;;  %v493_v16 = vadd.f32 %v461_v1, %v1114_v27 }
 0x163   :  { %617 = vst [vmem:[#allocation5 + $0x40] sm:$0xff] %v585_v7  ;;  %618 = vst [vmem:[#allocation5 + $0x48] sm:$0xff] %v586_v30  ;;  %v494_v4 = vadd.f32 %v462_v35, %v1114_v27  ;;  %v467_v54 = vmul.f32 %v435_v6, %v1018_v5  ;;  %v468_v50 = vmul.f32 %v435_v6, %v1023_v21 }
 0x164   :  { %v497_v51 = vadd.f32 %v465_v53, %v1104_v17  ;;  %v498_v44 = vadd.f32 %v466_v34, %v1104_v17  ;;  %v437_v20 = vmul.f32 %v1174_v47, %v1089_v58  ;;  %v441_v14 = vmul.f32 %v685_v24, %v1091_v37 }
 0x165   :  { %vm525_vm8 = vcmp.gt.f32.partialorder %v493_v16, 0.0  ;;  %vm526_vm9 = vcmp.gt.f32.partialorder %v494_v4, 0.0  ;;  %v557_v25 = vmul.f32 %v493_v16, %v1122_v42  ;;  %v558_v2 = vmul.f32 %v494_v4, %v1122_v42 }
 0x166   :  { %v499_v45 = vadd.f32 %v467_v54, %v1112_v10  ;;  %v500_v5 = vadd.f32 %v468_v50, %v1112_v10  ;;  %vm529_vm10 = vcmp.gt.f32.partialorder %v497_v51, 0.0  ;;  %vm530_vm11 = vcmp.gt.f32.partialorder %v498_v44, 0.0 }
 0x167   :  { %v589_v21 = vsel %vm525_vm8, %v493_v16, %v557_v25  ;;  %v590_v49 = vsel %vm526_vm9, %v494_v4, %v558_v2  ;;  %v561_v17 = vmul.f32 %v497_v51, %v1118_v9  ;;  %v562_v58 = vmul.f32 %v498_v44, %v1118_v9  ;;  %v1289_v25 = vld [vmem:[#allocation16_spill] sm:$0xff] }
 0x168   :  { %621 = vst [vmem:[#allocation5 + $0x60] sm:$0xff] %v589_v21  ;;  %622 = vst [vmem:[#allocation5 + $0x68] sm:$0xff] %v590_v49  ;;  %vm531_vm12 = vcmp.gt.f32.partialorder %v499_v45, 0.0  ;;  %vm532_vm13 = vcmp.gt.f32.partialorder %v500_v5, 0.0  ;;  %v563_v37 = vmul.f32 %v499_v45, %v1130_v3  ;;  %v564_v56 = vmul.f32 %v500_v5, %v1130_v3 }
 0x169   :  { %v593_v57 = vsel %vm529_vm10, %v497_v51, %v561_v17  ;;  %v594_v31 = vsel %vm530_vm11, %v498_v44, %v562_v58  ;;  %v469_v10 = vmul.f32 %v437_v20, %v991_v15  ;;  %v470_v0 = vmul.f32 %v437_v20, %v994_v22  ;;  %v1290_v58 = vld [vmem:[#allocation14_spill] sm:$0xff] }
 0x16a   :  { %v595_v6 = vsel %vm531_vm12, %v499_v45, %v563_v37  ;;  %v596_v63 = vsel %vm532_vm13, %v500_v5, %v564_v56  ;;  %625 = vst [vmem:[#allocation5 + $0x80] sm:$0xff] %v593_v57  ;;  %626 = vst [vmem:[#allocation5 + $0x88] sm:$0xff] %v594_v31  ;;  %v443_v9 = vmul.f32 %v685_v24, %v1100_v61  ;;  %v391_v45 = vpop.permute.xlu0 %390  ;;  %v1291_v56 = vld [vmem:[#allocation8_spill] sm:$0xff]  ;;  %v1292_v31 = vld [vmem:[#allocation9_spill] sm:$0xff] }
 0x16b   :  { %v473_v48 = vmul.f32 %v441_v14, %v1028_v8  ;;  %627 = vst [vmem:[#allocation5 + $0x90] sm:$0xff] %v595_v6  ;;  %628 = vst [vmem:[#allocation5 + $0x98] sm:$0xff] %v596_v63  ;;  %v501_v38 = vadd.f32 %v469_v10, %v1110_v32  ;;  %v502_v3 = vadd.f32 %v470_v0, %v1110_v32  ;;  %v1293_v63 = vld [vmem:[#allocation15_spill] sm:$0xff] }
 0x16c   :  { %v474_v18 = vmul.f32 %v441_v14, %v1031_v12  ;;  %v460_v15 = vmul.f32 %v1148_v46, %v937_v36  ;;  %v475_v41 = vmul.f32 %v443_v9, %v1052_v11  ;;  %v476_v60 = vmul.f32 %v443_v9, %v1055_v28 }
 0x16d   :  { %v505_v22 = vadd.f32 %v473_v48, %v1108_v19  ;;  %v491_v8 = vadd.f32 %v1170_v55, %v1116_v26  ;;  %vm533_vm14 = vcmp.gt.f32.partialorder %v501_v38, 0.0  ;;  %vm534_vm15 = vcmp.gt.f32.partialorder %v502_v3, 0.0 }
 0x16e   :  { %v565_v61 = vmul.f32 %v501_v38, %v1124_v43  ;;  %v566_v32 = vmul.f32 %v502_v3, %v1124_v43  ;;  %v506_v12 = vadd.f32 %v474_v18, %v1108_v19  ;;  %v492_v46 = vadd.f32 %v460_v15, %v1116_v26  ;;  %v395_v43 = vpop.permute.xlu1 %394 }
 0x16f   :  { %vm537_vm0 = vcmp.gt.f32.partialorder %v505_v22, 0.0  ;;  %v569_v36 = vmul.f32 %v505_v22, %v1128_v23  ;;  %v507_v28 = vadd.f32 %v475_v41, %v1116_v26  ;;  %v508_v35 = vadd.f32 %v476_v60, %v1116_v26 }
 0x170   :  { %v597_v1 = vsel %vm533_vm14, %v501_v38, %v565_v61  ;;  %v598_v11 = vsel %vm534_vm15, %v502_v3, %v566_v32  ;;  %vm538_vm1 = vcmp.gt.f32.partialorder %v506_v12, 0.0  ;;  %v570_v55 = vmul.f32 %v506_v12, %v1128_v23  ;;  %v1294_v61 = vld [vmem:[#allocation10_spill] sm:$0xff] }
 0x171   :  { %629 = vst [vmem:[#allocation5 + $0xa0] sm:$0xff] %v597_v1  ;;  %630 = vst [vmem:[#allocation5 + $0xa8] sm:$0xff] %v598_v11  ;;  %v601_v24 = vsel %vm537_vm0, %v505_v22, %v569_v36  ;;  %vm523_vm2 = vcmp.gt.f32.partialorder %v491_v8, 0.0  ;;  %vm524_vm3 = vcmp.gt.f32.partialorder %v492_v46, 0.0  ;;  %vm539_vm4 = vcmp.gt.f32.partialorder %v507_v28, 0.0  ;;  %v1297_v11 = vld [vmem:[#allocation13_spill] sm:$0xff] }
 0x172   :  { %633 = vst [vmem:[#allocation5 + $0xc0] sm:$0xff] %v601_v24  ;;  %vm540_vm5 = vcmp.gt.f32.partialorder %v508_v35, 0.0  ;;  %v555_v19 = vmul.f32 %v491_v8, %v395_v43  ;;  %v602_v7 = vsel %vm538_vm1, %v506_v12, %v570_v55  ;;  %v556_v30 = vmul.f32 %v492_v46, %v395_v43  ;;  %v1295_v12 = vld [vmem:[#allocation11_spill] sm:$0xff] }
 0x173   :  { %v571_v53 = vmul.f32 %v507_v28, %v395_v43  ;;  %v572_v34 = vmul.f32 %v508_v35, %v395_v43  ;;  %634 = vst [vmem:[#allocation5 + $0xc8] sm:$0xff] %v602_v7  ;;  %v423_v26 = vmul.f32 %v1138_v29, %v1098_v52  ;;  %v439_v23 = vmul.f32 %v1174_v47, %v1098_v52 }
 0x174   :  { %v587_v16 = vsel %vm523_vm2, %v491_v8, %v555_v19  ;;  %v588_v4 = vsel %vm524_vm3, %v492_v46, %v556_v30  ;;  %v431_v37 = vmul.f32 %v1154_v33, %v1290_v58  ;;  %v1296_v46 = vld [vmem:[#allocation12_spill] sm:$0xff] }
 0x175   :  { %v603_v54 = vsel %vm539_vm4, %v507_v28, %v571_v53  ;;  %v604_v50 = vsel %vm540_vm5, %v508_v35, %v572_v34  ;;  %619 = vst [vmem:[#allocation5 + $0x50] sm:$0xff] %v587_v16  ;;  %620 = vst [vmem:[#allocation5 + $0x58] sm:$0xff] %v588_v4  ;;  %v455_v51 = vmul.f32 %v423_v26, %v980_v13 }
 0x176   :  { %635 = vst [vmem:[#allocation5 + $0xd0] sm:$0xff] %v603_v54  ;;  %636 = vst [vmem:[#allocation5 + $0xd8] sm:$0xff] %v604_v50  ;;  %v456_v44 = vmul.f32 %v423_v26, %v983_v62  ;;  %v471_v20 = vmul.f32 %v439_v23, %v1040_v59  ;;  %v472_v14 = vmul.f32 %v439_v23, %v1043_v40 }
 0x177   :  { %v487_v29 = vadd.f32 %v455_v51, %v1289_v25  ;;  %v463_v57 = vmul.f32 %v431_v37, %v1291_v56  ;;  %v464_v10 = vmul.f32 %v431_v37, %v1292_v31 }
 0x178   :  { %v488_v2 = vadd.f32 %v456_v44, %v1289_v25  ;;  %v503_v52 = vadd.f32 %v471_v20, %v1289_v25  ;;  %v504_v47 = vadd.f32 %v472_v14, %v1289_v25 }
 0x179   :  { %vm519_vm6 = vcmp.gt.f32.partialorder %v487_v29, 0.0  ;;  %v551_v13 = vmul.f32 %v487_v29, %v391_v45  ;;  %v495_v9 = vadd.f32 %v463_v57, %v1293_v63  ;;  %v496_v48 = vadd.f32 %v464_v10, %v1293_v63 }
 0x17a   :  { %vm520_vm7 = vcmp.gt.f32.partialorder %v488_v2, 0.0  ;;  %vm535_vm8 = vcmp.gt.f32.partialorder %v503_v52, 0.0  ;;  %vm536_vm9 = vcmp.gt.f32.partialorder %v504_v47, 0.0  ;;  %v552_v5 = vmul.f32 %v488_v2, %v391_v45 }
 0x17b   :  { %v567_v62 = vmul.f32 %v503_v52, %v391_v45  ;;  %v568_v21 = vmul.f32 %v504_v47, %v391_v45  ;;  %v583_v59 = vsel %vm519_vm6, %v487_v29, %v551_v13  ;;  %vm527_vm10 = vcmp.gt.f32.partialorder %v495_v9, 0.0 }
 0x17c   :  { %v584_v49 = vsel %vm520_vm7, %v488_v2, %v552_v5  ;;  %615 = vst [vmem:[#allocation5 + $0x30] sm:$0xff] %v583_v59  ;;  %vm528_vm11 = vcmp.gt.f32.partialorder %v496_v48, 0.0 }
 0x17d   :  { %v599_v40 = vsel %vm535_vm8, %v503_v52, %v567_v62  ;;  %v600_v17 = vsel %vm536_vm9, %v504_v47, %v568_v21  ;;  %616 = vst [vmem:[#allocation5 + $0x38] sm:$0xff] %v584_v49 }
 0x17e   :  { %631 = vst [vmem:[#allocation5 + $0xb0] sm:$0xff] %v599_v40  ;;  %632 = vst [vmem:[#allocation5 + $0xb8] sm:$0xff] %v600_v17 }
 0x184   :  { %v220_v0 = vpop.xlane.xlu1 %219 }
 0x185   :  { %v228_v6 = vmul.f32 0.001953125, %v220_v0 }
 0x187   :  { %v236_v38 = vadd.f32 1e-05, %v228_v6 }
 0x188   :  { %v399_v3 = vpop.permute.xlu1 %398 }
 0x189   :  { %686 = vrsqrt.f32 %v236_v38  ;;  %v559_v18 = vmul.f32 %v495_v9, %v399_v3  ;;  %v560_v15 = vmul.f32 %v496_v48, %v399_v3 }
 0x18b   :  { %v591_v22 = vsel %vm527_vm10, %v495_v9, %v559_v18  ;;  %v592_v41 = vsel %vm528_vm11, %v496_v48, %v560_v15 }
 0x18c   :  { %623 = vst [vmem:[#allocation5 + $0x70] sm:$0xff] %v591_v22  ;;  %624 = vst [vmem:[#allocation5 + $0x78] sm:$0xff] %v592_v41 }
 0x193   :  { %v687_v33 = vpop.eup %686 }
 0x194   :  { %v445_v60 = vmul.f32 %v687_v33, %v1093_v39  ;;  %v447_v8 = vmul.f32 %v687_v33, %v1290_v58 }
 0x196   :  { %v477_v32 = vmul.f32 %v445_v60, %v1294_v61  ;;  %v478_v36 = vmul.f32 %v445_v60, %v1295_v12  ;;  %v479_v1 = vmul.f32 %v447_v8, %v1296_v46  ;;  %v480_v28 = vmul.f32 %v447_v8, %v1297_v11 }
 0x198   :  { %v509_v35 = vadd.f32 %v477_v32, %v1114_v27  ;;  %v510_v55 = vadd.f32 %v478_v36, %v1114_v27  ;;  %v511_v24 = vadd.f32 %v479_v1, %v1293_v63  ;;  %v512_v43 = vadd.f32 %v480_v28, %v1293_v63 }
 0x19a   :  { %vm541_vm12 = vcmp.gt.f32.partialorder %v509_v35, 0.0  ;;  %vm542_vm13 = vcmp.gt.f32.partialorder %v510_v55, 0.0  ;;  %v573_v39 = vmul.f32 %v509_v35, %v1122_v42  ;;  %v574_v19 = vmul.f32 %v510_v55, %v1122_v42 }
 0x19b   :  { %vm543_vm14 = vcmp.gt.f32.partialorder %v511_v24, 0.0  ;;  %vm544_vm15 = vcmp.gt.f32.partialorder %v512_v43, 0.0  ;;  %v575_v7 = vmul.f32 %v511_v24, %v399_v3  ;;  %v576_v30 = vmul.f32 %v512_v43, %v399_v3 }
 0x19c   :  { %v605_v53 = vsel %vm541_vm12, %v509_v35, %v573_v39  ;;  %v606_v34 = vsel %vm542_vm13, %v510_v55, %v574_v19 }
 0x19d   :  { %637 = vst [vmem:[#allocation5 + $0xe0] sm:$0xff] %v605_v53  ;;  %638 = vst [vmem:[#allocation5 + $0xe8] sm:$0xff] %v606_v34  ;;  %v607_v27 = vsel %vm543_vm14, %v511_v24, %v575_v7  ;;  %v608_v16 = vsel %vm544_vm15, %v512_v43, %v576_v30 }
 0x19e   :  { %639 = vst [vmem:[#allocation5 + $0xf0] sm:$0xff] %v607_v27  ;;  %640 = vst [vmem:[#allocation5 + $0xf8] sm:$0xff] %v608_v16 }
 0x19f   :  { %721 = shalt.err (!%p718_p12)
}
 0x1a0   :  { %s722_s29 = scalar_lea.hbm %s1270_s4, 4096 }
 0x1a1   :  { %p723_p13 = scmp.ne.s32.totalorder %s1270_s4, %s722_s29  ;;  %p726_p0 = scmp.lt.u32.totalorder %s722_s29, %s1270_s4 }
 0x1a3   :  { %p728_p1 = pnand %p726_p0, %p723_p13 }
 0x1a5   :  { %731 = shalt.err (!%p728_p1)
}
 0x1a6   :  { %652 = dma.vmem_to_hbm [thread:$0]  %s647_s3, 4096, %s1270_s4, [#allocation4], %s737_s25, %s737_s25, %s738_s26  }
 0x1a7   :  { %734 = dma.done.wait [#allocation4], 4096  }
 0x1a8   :  { %735 = vsyncadd [#allocation4], 4294963200 }
 0x1a9   :  { %656 = vsyncpa [#allocation3], 1 }
 0x1aa   :  { %657 = vsyncpa [#allocation4], 1 }

</bundles_post_ra>
